<compile_context>
chip_gen: v7x
topology: tpu7x:2x2x1
jax: 0.10.0
libtpu: 0.0.40
codegen_flags: <defaults>
</compile_context>

<pallas_src>
import math
from functools import partial

import jax
import jax.numpy as jnp
from jax import lax
from jax.experimental import pallas as pl
from jax.experimental.pallas import tpu as pltpu

EPS = 1e-5          # nn.LayerNorm default eps
NEG = -1e30         # softmax mask fill (finite -> no inf-inf NaNs)

_DN_NT = (((1,), (1,)), ((), ()))   # contract last dim of both operands: A @ B^T
_DN_NN = (((1,), (0,)), ((), ()))   # plain A @ B


def _round_up(x, m):
    return ((x + m - 1) // m) * m


def _masked_layernorm(h, gamma, beta, d_actual):
    """PyTorch LayerNorm over the first `d_actual` lanes of a lane-padded last
    dim. Padded lanes of the result are exactly zero (gamma/beta zero-padded)."""
    lane = lax.broadcasted_iota(jnp.int32, h.shape, 1)
    inv_d = 1.0 / d_actual
    mu = jnp.sum(h, axis=-1, keepdims=True) * inv_d
    c = jnp.where(lane < d_actual, h - mu, 0.0)
    var = jnp.sum(c * c, axis=-1, keepdims=True) * inv_d
    return c * lax.rsqrt(var + EPS) * gamma + beta


def _cross_attn_kernel(x_ref, attr_ref, ln1_ref, h_ref, *,
                       a_actual, d_actual, inv_sqrt_d):
    """One row tile of: h = LN1(softmax(x @ attr^T / sqrt(D)) @ attr + x)."""
    x = x_ref[...]                        # f32  [tm, Dp]
    attr_bf = attr_ref[...]               # bf16 [Ap, Dp] (bf16 from the wrapper)

    q = (x * inv_sqrt_d).astype(jnp.bfloat16)        # scale folded into q
    s = lax.dot_general(q, attr_bf, _DN_NT,
                        preferred_element_type=jnp.float32)        # [tm, Ap]
    col = lax.broadcasted_iota(jnp.int32, s.shape, 1)
    s = jnp.where(col < a_actual, s, NEG)            # mask padded attr columns
    s = s - jnp.max(s, axis=-1, keepdims=True)
    p = jnp.exp(s)
    p = p * pl.reciprocal(jnp.sum(p, axis=-1, keepdims=True), approx=True)

    h_attn = lax.dot_general(p.astype(jnp.bfloat16), attr_bf, _DN_NN,
                             preferred_element_type=jnp.float32)   # [tm, Dp]
    ln1 = ln1_ref[...]
    h_ref[...] = _masked_layernorm(h_attn + x, ln1[0:1, :], ln1[1:2, :], d_actual)


def _self_attn_kernel(hq_ref, hkv_ref, x_ref, attr_ref, ln2_ref,
                      simi_ref, feat_ref, m_ref, l_ref, acc_ref, *,
                      n_actual, d_actual, inv_sqrt_d, tk):
    """Flash-style online-softmax self-attention over kv tiles, then
    out = LN2(self_attn(h) + x) and simi = out @ attr^T (one query-row tile)."""
    kv = pl.program_id(1)

    @pl.when(kv == 0)
    def _init():
        m_ref[...] = jnp.full(m_ref.shape, -jnp.inf, jnp.float32)
        l_ref[...] = jnp.zeros(l_ref.shape, jnp.float32)
        acc_ref[...] = jnp.zeros(acc_ref.shape, jnp.float32)

    q = (hq_ref[...] * inv_sqrt_d).astype(jnp.bfloat16)    # [tm, Dp]
    kv_bf = hkv_ref[...].astype(jnp.bfloat16)              # [tk, Dp], k == v

    s = lax.dot_general(q, kv_bf, _DN_NT,
                        preferred_element_type=jnp.float32)        # [tm, tk]
    col = lax.broadcasted_iota(jnp.int32, s.shape, 1) + kv * tk
    s = jnp.where(col < n_actual, s, NEG)            # mask padded image rows

    m_new = jnp.maximum(m_ref[...], jnp.max(s, axis=-1, keepdims=True))
    alpha = jnp.exp(m_ref[...] - m_new)
    p = jnp.exp(s - m_new)
    l_ref[...] = alpha * l_ref[...] + jnp.sum(p, axis=-1, keepdims=True)
    acc_ref[...] = alpha * acc_ref[...] + lax.dot_general(
        p.astype(jnp.bfloat16), kv_bf, _DN_NN,
        preferred_element_type=jnp.float32)
    m_ref[...] = m_new

    @pl.when(kv == pl.num_programs(1) - 1)
    def _finalize():
        h2 = acc_ref[...] * pl.reciprocal(l_ref[...], approx=True)
        ln2 = ln2_ref[...]
        # NB: the PyTorch module adds the ORIGINAL input x here (not h).
        out = _masked_layernorm(h2 + x_ref[...], ln2[0:1, :], ln2[1:2, :],
                                d_actual)
        feat_ref[...] = out.astype(feat_ref.dtype)
        simi_ref[...] = lax.dot_general(
            out.astype(jnp.bfloat16), attr_ref[...], _DN_NT,
            preferred_element_type=jnp.float32).astype(simi_ref.dtype)


def image_to_attribute_transformer(img_features, attribute_features,
                                   gamma1, beta1, gamma2, beta2):
    """Pallas implementation of ImageToAttributeTransformer.forward.

    img_features: [N, D], attribute_features: [A, D]
    returns (img_attr_simi [N, A], img_features_out [N, D]) in f32.
    """
    N, D = img_features.shape
    A, _ = attribute_features.shape

    # Lane-dense padding: last dims to multiples of 128, rows to multiples of 8.
    Dp = _round_up(D, 128)
    Ap = _round_up(A, 128)
    Np = _round_up(N, 8)
    tm = math.gcd(Np, 128)    # row tile: divides Np, multiple of 8, <= 128
    tk = tm                   # kv tile for the flash self-attention axis

    x_p = jnp.pad(img_features.astype(jnp.float32), ((0, Np - N), (0, Dp - D)))
    # attr only ever feeds the MXU -> ship it as bf16 (halves its DMA bytes).
    attr_p = jnp.pad(attribute_features.astype(jnp.bfloat16),
                     ((0, Ap - A), (0, Dp - D)))
    # LayerNorm params stacked 2 rows per pass; zero-padding keeps padded lanes 0.
    ln1 = jnp.pad(jnp.stack([gamma1, beta1]).astype(jnp.float32),
                  ((0, 0), (0, Dp - D)))
    ln2 = jnp.pad(jnp.stack([gamma2, beta2]).astype(jnp.float32),
                  ((0, 0), (0, Dp - D)))

    inv_sqrt_d = 1.0 / math.sqrt(D)
    vmem_limit = 48 * 1024 * 1024   # explicit, with headroom (<= v7x's 64 MiB)

    # ---- pass 1: cross attention + LayerNorm1, row-tiled -------------------
    h = pl.pallas_call(
        partial(_cross_attn_kernel, a_actual=A, d_actual=D,
                inv_sqrt_d=inv_sqrt_d),
        grid_spec=pltpu.PrefetchScalarGridSpec(
            num_scalar_prefetch=0,
            grid=(Np // tm,),
            in_specs=[
                pl.BlockSpec((tm, Dp), lambda i: (i, 0)),
                pl.BlockSpec((Ap, Dp), lambda i: (0, 0)),   # resident across rows
                pl.BlockSpec((2, Dp), lambda i: (0, 0)),
            ],
            out_specs=pl.BlockSpec((tm, Dp), lambda i: (i, 0)),
        ),
        out_shape=jax.ShapeDtypeStruct((Np, Dp), jnp.float32),
        compiler_params=pltpu.CompilerParams(
            dimension_semantics=("parallel",),
            vmem_limit_bytes=vmem_limit),
        cost_estimate=pl.CostEstimate(
            flops=int(4 * Np * Ap * Dp + 10 * Np * Dp),
            transcendentals=int(Np * (Ap + 2)),
            bytes_accessed=int(4 * 2 * Np * Dp + 2 * Ap * Dp + 8 * Dp),
        ),
    )(x_p, attr_p, ln1)

    # ---- pass 2: flash self-attention + LayerNorm2 + similarity ------------
    simi_p, feat_p = pl.pallas_call(
        partial(_self_attn_kernel, n_actual=N, d_actual=D,
                inv_sqrt_d=inv_sqrt_d, tk=tk),
        grid_spec=pltpu.PrefetchScalarGridSpec(
            num_scalar_prefetch=0,
            grid=(Np // tm, Np // tk),       # rows (parallel) x kv (arbitrary)
            in_specs=[
                pl.BlockSpec((tm, Dp), lambda i, k: (i, 0)),  # h: query rows
                pl.BlockSpec((tk, Dp), lambda i, k: (k, 0)),  # h: kv rows
                pl.BlockSpec((tm, Dp), lambda i, k: (i, 0)),  # original x
                pl.BlockSpec((Ap, Dp), lambda i, k: (0, 0)),  # attr (resident)
                pl.BlockSpec((2, Dp), lambda i, k: (0, 0)),   # ln2 params
            ],
            out_specs=[
                pl.BlockSpec((tm, Ap), lambda i, k: (i, 0)),
                pl.BlockSpec((tm, Dp), lambda i, k: (i, 0)),
            ],
            scratch_shapes=[
                pltpu.VMEM((tm, 1), jnp.float32),    # m (running max)
                pltpu.VMEM((tm, 1), jnp.float32),    # l (running denominator)
                pltpu.VMEM((tm, Dp), jnp.float32),   # acc
            ],
        ),
        out_shape=(
            jax.ShapeDtypeStruct((Np, Ap), jnp.float32),
            jax.ShapeDtypeStruct((Np, Dp), jnp.float32),
        ),
        compiler_params=pltpu.CompilerParams(
            dimension_semantics=("parallel", "arbitrary"),
            vmem_limit_bytes=vmem_limit),
        cost_estimate=pl.CostEstimate(
            flops=int(4 * Np * Np * Dp + 2 * Np * Ap * Dp + 10 * Np * Dp),
            transcendentals=int(Np * (Np + 4)),
            bytes_accessed=int(4 * (3 * Np * Dp + Np * Ap) + 2 * Ap * Dp + 8 * Dp),
        ),
    )(h, h, x_p, attr_p, ln2)

    return simi_p[:N, :A], feat_p[:N, :D]


# ------------------------- references for checking --------------------------
def _ln_ref(h, g, b):
    mu = h.mean(-1, keepdims=True)
    var = ((h - mu) ** 2).mean(-1, keepdims=True)
    return (h - mu) / jnp.sqrt(var + EPS) * g + b


def _reference_f32(img, attr, g1, b1, g2, b2):
    # Exact f32 mirror of the PyTorch module semantics.
    d = img.shape[-1]
    scale = 1.0 / jnp.sqrt(jnp.float32(d))
    x = img
    h = jax.nn.softmax(img @ attr.T * scale, axis=-1) @ attr
    h = _ln_ref(h + x, g1, b1)
    h2 = jax.nn.softmax(h @ h.T * scale, axis=-1) @ h
    h2 = _ln_ref(h2 + x, g2, b2)
    return h2 @ attr.T, h2


def _reference_bf16_mxu(img, attr, g1, b1, g2, b2):
    # Same math with the kernel's MXU precision policy (bf16 operands, f32 acc).
    scale = jnp.float32(1.0 / (float(img.shape[-1]) ** 0.5))

    def mm(a, b, dn):
        return lax.dot_general(a.astype(jnp.bfloat16), b.astype(jnp.bfloat16),
                               dn, preferred_element_type=jnp.float32)

    x = img
    h = mm(jax.nn.softmax(mm(img * scale, attr, _DN_NT), axis=-1), attr, _DN_NN)
    h = _ln_ref(h + x, g1, b1)
    h2 = mm(jax.nn.softmax(mm(h * scale, h, _DN_NT), axis=-1), h, _DN_NN)
    h2 = _ln_ref(h2 + x, g2, b2)
    return mm(h2, attr, _DN_NT), h2


if __name__ == "__main__":
    N, A, D = 8, 16, 32   # image tokens, num attributes, hidden dim

    key = jax.random.PRNGKey(0)
    k_img, k_attr = jax.random.split(key)
    img_features = jax.random.normal(k_img, (N, D), dtype=jnp.float32)
    attribute_features = jax.random.normal(k_attr, (A, D), dtype=jnp.float32)

    # LayerNorm params: PyTorch default init (weight=1, bias=0).
    gamma1 = jnp.ones((D,), jnp.float32)
    beta1 = jnp.zeros((D,), jnp.float32)
    gamma2 = jnp.ones((D,), jnp.float32)
    beta2 = jnp.zeros((D,), jnp.float32)

    simi, feat = image_to_attribute_transformer(
        img_features, attribute_features, gamma1, beta1, gamma2, beta2)
    jax.block_until_ready((simi, feat))

    # Tight check vs. a reference with the SAME precision policy (bf16 MXU
    # operands, f32 accumulation); slack covers the approx reciprocals and the
    # online-softmax reassociation.
    bs, bf = _reference_bf16_mxu(img_features, attribute_features,
                                 gamma1, beta1, gamma2, beta2)
    assert jnp.allclose(simi, bs, atol=6e-2, rtol=3e-2)
    assert jnp.allclose(feat, bf, atol=6e-2, rtol=3e-2)

    # Loose sanity check vs. exact f32 PyTorch semantics; tolerance reflects
    # the intentional bf16 MXU operands through two chained attention blocks.
    fs, ff = _reference_f32(img_features, attribute_features,
                            gamma1, beta1, gamma2, beta2)
    assert jnp.allclose(simi, fs, atol=4e-1, rtol=6e-2)
    assert jnp.allclose(feat, ff, atol=2e-1, rtol=6e-2)

    print("KERNEL_OK")
</pallas_src>

<mosaic_0001>
module attributes {stable_mosaic.version = 11 : i64} {
  func.func @_cross_attn_kernel(%arg0: i32, %arg1: memref<8x128xf32, #tpu.memory_space<vmem>>, %arg2: memref<128x128xbf16, #tpu.memory_space<vmem>>, %arg3: memref<2x128xf32, #tpu.memory_space<vmem>>, %arg4: memref<8x128xf32, #tpu.memory_space<vmem>>) attributes {dimension_semantics = [#tpu.dimension_semantics<parallel>], iteration_bounds = array<i64: 1>, scalar_prefetch = 0 : i64, scratch_operands = 0 : i64, tpu.core_type = #tpu.core_type<tc>, window_params = [{transform_indices = @transform_0, window_bounds = array<i64: 8, 128>}, {pipeline_mode = #tpu.pipeline_mode<synchronous>, transform_indices = @transform_1, window_bounds = array<i64: 128, 128>}, {pipeline_mode = #tpu.pipeline_mode<synchronous>, transform_indices = @transform_2, window_bounds = array<i64: 2, 128>}, {transform_indices = @transform_3, window_bounds = array<i64: 8, 128>}]} {
    %c0 = arith.constant 0 : index
    %c0_0 = arith.constant 0 : index
    %0 = vector.load %arg1[%c0, %c0_0] : memref<8x128xf32, #tpu.memory_space<vmem>>, vector<8x128xf32>
    %c0_1 = arith.constant 0 : index
    %c0_2 = arith.constant 0 : index
    %1 = vector.load %arg2[%c0_1, %c0_2] : memref<128x128xbf16, #tpu.memory_space<vmem>>, vector<128x128xbf16>
    %cst = arith.constant 0.176776692 : f32
    %2 = vector.broadcast %cst : f32 to vector<8x128xf32>
    %3 = arith.mulf %0, %2 : vector<8x128xf32>
    %4 = arith.truncf %3 : vector<8x128xf32> to vector<8x128xbf16>
    %cst_3 = arith.constant dense<0.000000e+00> : vector<8x128xf32>
    %5 = tpu.matmul %4, %1, %cst_3 {dimension_numbers = #tpu.dot_dimension_numbers<[1], [1], [0], [0], [0, 0, 1, 0], [], []>} : vector<8x128xbf16>, vector<128x128xbf16>, vector<8x128xf32> -> vector<8x128xf32>
    %6 = tpu.iota {dimensions = array<i32: 1>} : vector<8x128xi32>
    %c16_i32 = arith.constant 16 : i32
    %7 = vector.broadcast %c16_i32 : i32 to vector<8x128xi32>
    %8 = arith.cmpi slt, %6, %7 : vector<8x128xi32>
    %cst_4 = arith.constant -1.000000e+30 : f32
    %9 = vector.broadcast %cst_4 : f32 to vector<8x128xf32>
    %10 = arith.select %8, %5, %9 : vector<8x128xi1>, vector<8x128xf32>
    %cst_5 = arith.constant dense<0xFF800000> : vector<8xf32>
    %11 = vector.multi_reduction <maximumf>, %10, %cst_5 [1] : vector<8x128xf32> to vector<8xf32>
    %12 = vector.shape_cast %11 : vector<8xf32> to vector<8x1xf32>
    %13 = vector.broadcast %12 : vector<8x1xf32> to vector<8x128xf32>
    %14 = arith.subf %10, %13 : vector<8x128xf32>
    %15 = math.exp %14 : vector<8x128xf32>
    %cst_6 = arith.constant dense<0.000000e+00> : vector<8xf32>
    %16 = vector.multi_reduction <add>, %15, %cst_6 [1] : vector<8x128xf32> to vector<8xf32>
    %17 = vector.shape_cast %16 : vector<8xf32> to vector<8x1xf32>
    %18 = tpu.reciprocal %17 {approx = true} : vector<8x1xf32> -> vector<8x1xf32>
    %19 = vector.broadcast %18 : vector<8x1xf32> to vector<8x128xf32>
    %20 = arith.mulf %15, %19 : vector<8x128xf32>
    %21 = arith.truncf %20 : vector<8x128xf32> to vector<8x128xbf16>
    %cst_7 = arith.constant dense<0.000000e+00> : vector<8x128xf32>
    %22 = tpu.matmul %21, %1, %cst_7 {dimension_numbers = #tpu.dot_dimension_numbers<[1], [0], [0], [1], [0, 0, 1, 1], [], []>} : vector<8x128xbf16>, vector<128x128xbf16>, vector<8x128xf32> -> vector<8x128xf32>
    %c0_8 = arith.constant 0 : index
    %c0_9 = arith.constant 0 : index
    %23 = vector.load %arg3[%c0_8, %c0_9] : memref<2x128xf32, #tpu.memory_space<vmem>>, vector<2x128xf32>
    %24 = arith.addf %22, %0 : vector<8x128xf32>
    %25 = vector.extract_strided_slice %23 {offsets = [0, 0], sizes = [1, 128], strides = [1, 1]} : vector<2x128xf32> to vector<1x128xf32>
    %26 = vector.extract_strided_slice %23 {offsets = [1, 0], sizes = [1, 128], strides = [1, 1]} : vector<2x128xf32> to vector<1x128xf32>
    %27 = tpu.iota {dimensions = array<i32: 1>} : vector<8x128xi32>
    %cst_10 = arith.constant dense<0.000000e+00> : vector<8xf32>
    %28 = vector.multi_reduction <add>, %24, %cst_10 [1] : vector<8x128xf32> to vector<8xf32>
    %29 = vector.shape_cast %28 : vector<8xf32> to vector<8x1xf32>
    %cst_11 = arith.constant 3.125000e-02 : f32
    %30 = vector.broadcast %cst_11 : f32 to vector<8x1xf32>
    %31 = arith.mulf %29, %30 : vector<8x1xf32>
    %c32_i32 = arith.constant 32 : i32
    %32 = vector.broadcast %c32_i32 : i32 to vector<8x128xi32>
    %33 = arith.cmpi slt, %27, %32 : vector<8x128xi32>
    %34 = vector.broadcast %31 : vector<8x1xf32> to vector<8x128xf32>
    %35 = arith.subf %24, %34 : vector<8x128xf32>
    %cst_12 = arith.constant 0.000000e+00 : f32
    %36 = vector.broadcast %cst_12 : f32 to vector<8x128xf32>
    %37 = arith.select %33, %35, %36 : vector<8x128xi1>, vector<8x128xf32>
    %38 = arith.mulf %37, %37 : vector<8x128xf32>
    %cst_13 = arith.constant dense<0.000000e+00> : vector<8xf32>
    %39 = vector.multi_reduction <add>, %38, %cst_13 [1] : vector<8x128xf32> to vector<8xf32>
    %40 = vector.shape_cast %39 : vector<8xf32> to vector<8x1xf32>
    %cst_14 = arith.constant 3.125000e-02 : f32
    %41 = vector.broadcast %cst_14 : f32 to vector<8x1xf32>
    %42 = arith.mulf %40, %41 : vector<8x1xf32>
    %cst_15 = arith.constant 9.99999974E-6 : f32
    %43 = vector.broadcast %cst_15 : f32 to vector<8x1xf32>
    %44 = arith.addf %42, %43 : vector<8x1xf32>
    %45 = math.rsqrt %44 : vector<8x1xf32>
    %46 = vector.broadcast %45 : vector<8x1xf32> to vector<8x128xf32>
    %47 = arith.mulf %37, %46 : vector<8x128xf32>
    %48 = vector.broadcast %25 : vector<1x128xf32> to vector<8x128xf32>
    %49 = arith.mulf %47, %48 : vector<8x128xf32>
    %50 = vector.broadcast %26 : vector<1x128xf32> to vector<8x128xf32>
    %51 = arith.addf %49, %50 : vector<8x128xf32>
    %c0_16 = arith.constant 0 : index
    %c0_17 = arith.constant 0 : index
    %52 = vector.load %arg4[%c0_16, %c0_17] : memref<8x128xf32, #tpu.memory_space<vmem>>, vector<8x128xf32>
    tpu.vector_store %arg4[%c0_16, %c0_17], %51 {strides = array<i32>} : memref<8x128xf32, #tpu.memory_space<vmem>>, vector<8x128xf32>,
    return
  }
  func.func @transform_0(%arg0: i32) -> (i32, i32) {
    %c0_i32 = arith.constant 0 : i32
    %c0_i32_0 = arith.constant 0 : i32
    return %arg0, %c0_i32 : i32, i32
  }
  func.func @transform_1(%arg0: i32) -> (i32, i32) {
    %c0_i32 = arith.constant 0 : i32
    %c0_i32_0 = arith.constant 0 : i32
    %c0_i32_1 = arith.constant 0 : i32
    return %c0_i32, %c0_i32_0 : i32, i32
  }
  func.func @transform_2(%arg0: i32) -> (i32, i32) {
    %c0_i32 = arith.constant 0 : i32
    %c0_i32_0 = arith.constant 0 : i32
    %c0_i32_1 = arith.constant 0 : i32
    return %c0_i32, %c0_i32_0 : i32, i32
  }
  func.func @transform_3(%arg0: i32) -> (i32, i32) {
    %c0_i32 = arith.constant 0 : i32
    %c0_i32_0 = arith.constant 0 : i32
    return %arg0, %c0_i32 : i32, i32
  }
}

</mosaic_0001>

<bundles_post_ra>
// kernel: tpu_custom_call.1
= control target key start
LH: loop header
LB: loop body
LE: loop exit
PB: predicated region body
PF: predicated region fallthrough
CT: control target
= control target key end

     0   :  { %8 = vsyncpa [#allocation3], 0  ;;  %s476_s0 = inlined_call_operand.hbm [shape: f32[8,128], index: 0, kind: input, shape index: {}]   ;;  %s477_s1 = inlined_call_operand.hbm [shape: bf16[128,128], index: 1, kind: input, shape index: {}]   ;;  %s478_s2 = inlined_call_operand.vmem [shape: f32[2,128], index: 2, kind: input, shape index: {}]   ;;  %s479_s3 = inlined_call_operand.hbm [shape: f32[8,128], index: 3, kind: output, shape index: {}]  }
   0x1   :  { %9 = vsyncpa [#allocation6], 0 }
   0x2   :  { %10 = vsyncpa [#allocation4], 0  ;;  %s403_s12 = smov [#allocation2]   ;;  %s404_s14 = smov [#allocation5]  }
   0x3   :  { %s17_s13 = sshll.u32 %s403_s12, 4  ;;  %s26_s15 = sshll.u32 %s404_s14, 4  ;;  %s18_s13 = int_to_ptr.vmem [resolvable:$true] %s17_s13  ;;  %s430_s15 = int_to_ptr.vmem [resolvable:$true] %s26_s15 }
   0x4   :  { %s331_s18 = scalar_lea.hbm %s476_s0, 128 }
   0x5   :  { %p332_p0 = scmp.ne.s32.totalorder %s476_s0, %s331_s18  ;;  %p335_p1 = scmp.lt.u32.totalorder %s331_s18, %s476_s0 }
   0x7   :  { %p337_p2 = pnand %p335_p1, %p332_p0 }
   0x9   :  { %340 = shalt.err (!%p337_p2)
}
   0xa   :  { %s341_s23 = scalar_lea.vmem %s18_s13, 128  ;;  %p346_p4 = scmp.lt.s32.totalorder %s18_s13, %s18_s13 }
   0xb   :  { %p342_p3 = scmp.ne.s32.totalorder %s18_s13, %s341_s23  ;;  %p347_p5 = scmp.lt.s32.totalorder %s341_s23, %s341_s23 }
   0xd   :  { %p348_p6 = por %p347_p5, %p346_p4 }
   0xf   :  { %p349_p7 = pnand %p348_p6, %p342_p3 }
  0x11   :  { %352 = shalt.err (!%p349_p7)
}
  0x12   :  { %20 = dma.hbm_to_vmem [thread:$0]  %s476_s0, 128, %s18_s13, [#allocation3]  }
  0x13   :  { %s353_s28 = scalar_lea.hbm %s477_s1, 1024 }
  0x14   :  { %p354_p8 = scmp.ne.s32.totalorder %s477_s1, %s353_s28  ;;  %p357_p9 = scmp.lt.u32.totalorder %s353_s28, %s477_s1 }
  0x16   :  { %p359_p10 = pnand %p357_p9, %p354_p8 }
  0x18   :  { %362 = shalt.err (!%p359_p10)
}
  0x19   :  { %s363_s6 = scalar_lea.vmem %s430_s15, 1024  ;;  %p368_p12 = scmp.lt.s32.totalorder %s430_s15, %s430_s15 }
  0x1a   :  { %p364_p11 = scmp.ne.s32.totalorder %s430_s15, %s363_s6  ;;  %p369_p13 = scmp.lt.s32.totalorder %s363_s6, %s363_s6 }
  0x1c   :  { %p370_p0 = por %p369_p13, %p368_p12 }
  0x1e   :  { %p371_p1 = pnand %p370_p0, %p364_p11 }
  0x20   :  { %374 = shalt.err (!%p371_p1)
}
  0x21   :  { %s405_s0 = smov 64   ;;  %s406_s7 = smov 4  }
  0x22   :  { %32 = dma.hbm_to_vmem [thread:$0]  %s477_s1, 1024, %s430_s15, [#allocation6], %s405_s0, %s405_s0, %s406_s7  }
  0x23   :  { %397 = dma.done.wait [#allocation3], 128  }
  0x24   :  { %398 = vsyncadd [#allocation3], 4294967168 }
  0x25   :  { %399 = dma.done.wait [#allocation6], 1024  }
  0x26   :  { %400 = vsyncadd [#allocation6], 4294966272  ;;  %v407_v0 = vmov 0.0   ;;  %vm408_vm0 = vmmov 0   ;;  %v317_v1 = vld [vmem:[#allocation5] sm:$0xff]   ;;  %v318_v2 = vld [vmem:[#allocation5 + $0x8] sm:$0xff]   ;;  %v149_v12 = vlaneseq }
  0x27   :  { %270 = vmatprep.subr.bf16.mxu0 %v407_v0  ;;  %286 = vmatprep.mubr.msk.bf16.mxu0 %vm408_vm0, %v407_v0  ;;  %v319_v3 = vld [vmem:[#allocation5 + $0x10] sm:$0xff]   ;;  %v320_v4 = vld [vmem:[#allocation5 + $0x18] sm:$0xff]   ;;  %v321_v5 = vld [vmem:[#allocation5 + $0x20] sm:$0xff]   ;;  %s409_s11 = smov [#allocation7]  }
  0x28   :  { %290 = vmatprep.subr.bf16.mxu1 %v407_v0  ;;  %306 = vmatprep.mubr.msk.bf16.mxu1 %vm408_vm0, %v407_v0  ;;  %v322_v6 = vld [vmem:[#allocation5 + $0x28] sm:$0xff]   ;;  %v323_v7 = vld [vmem:[#allocation5 + $0x30] sm:$0xff]   ;;  %v324_v8 = vld [vmem:[#allocation5 + $0x38] sm:$0xff]   ;;  %v150_v13 = vand.u32 127, %v149_v12  ;;  %v218_v40 = vshrl.u32 %v149_v12, 7  ;;  %s234_s12 = sshll.u32 %s409_s11, 4  ;;  %s235_s12 = int_to_ptr.vmem [resolvable:$true] %s234_s12 }
  0x29   :  { %271 = vmatpush3.bf16.xpose.msra.mxu0 %v317_v1  ;;  %291 = vmatpush3.bf16.msra.mxu1 %v317_v1  ;;  %v42_v9 = vld [vmem:[#allocation2] sm:$0xff]  ;;  %s375_s13 = scalar_lea.vmem %s235_s12, 128  ;;  %p380_p3 = scmp.lt.s32.totalorder %s235_s12, %s235_s12 }
  0x2a   :  { %272 = vmatprep.subr.bf16.mxu0 %v407_v0  ;;  %292 = vmatprep.subr.bf16.mxu1 %v407_v0  ;;  %v59_v10 = vmul.f32 0.17677669, %v42_v9  ;;  %vm151_vm1 = vcmp.lt.s32.totalorder %v150_v13, 16  ;;  %vm207_vm2 = vcmp.lt.s32.totalorder %v150_v13, 32  ;;  %v219_v41 = vsub.s32 0, %v218_v40  ;;  %p376_p2 = scmp.ne.s32.totalorder %s235_s12, %s375_s13  ;;  %p381_p4 = scmp.lt.s32.totalorder %s375_s13, %s375_s13 }
  0x2b   :  { %v163_v42 = vld [vmem:[%s478_s2] sm:$0x3]  ;;  %v224_v43 = vsub.s32 1, %v218_v40 }
  0x2c   :  { %v60_v11 = vpack.c.bf16 %v59_v10, %v59_v10  ;;  %v220_v44 = vrot.slane %v163_v42, %v219_v41  ;;  %p382_p5 = por %p381_p4, %p380_p3 }
  0x2d   :  { %293 = vmatpush3.bf16.msra.mxu1 %v318_v2  ;;  %v225_v47 = vrot.slane %v163_v42, %v224_v43 }
  0x2e   :  { %294 = vmatprep.subr.bf16.mxu1 %v407_v0  ;;  %p383_p6 = pnand %p382_p5, %p376_p2 }
  0x31   :  { %273 = vmatpush3.bf16.xpose.msra.mxu0 %v318_v2  ;;  %295 = vmatpush3.bf16.msra.mxu1 %v319_v3 }
  0x32   :  { %274 = vmatprep.subr.bf16.mxu0 %v407_v0  ;;  %296 = vmatprep.subr.bf16.mxu1 %v407_v0 }
  0x35   :  { %297 = vmatpush3.bf16.msra.mxu1 %v320_v4 }
  0x36   :  { %298 = vmatprep.subr.bf16.mxu1 %v407_v0 }
  0x39   :  { %275 = vmatpush3.bf16.xpose.msra.mxu0 %v319_v3  ;;  %299 = vmatpush3.bf16.msra.mxu1 %v321_v5 }
  0x3a   :  { %276 = vmatprep.subr.bf16.mxu0 %v407_v0  ;;  %300 = vmatprep.subr.bf16.mxu1 %v407_v0 }
  0x3d   :  { %301 = vmatpush3.bf16.msra.mxu1 %v322_v6 }
  0x3e   :  { %302 = vmatprep.subr.bf16.mxu1 %v407_v0 }
  0x41   :  { %277 = vmatpush3.bf16.xpose.msra.mxu0 %v320_v4  ;;  %303 = vmatpush3.bf16.msra.mxu1 %v323_v7 }
  0x42   :  { %278 = vmatprep.subr.bf16.mxu0 %v407_v0  ;;  %304 = vmatprep.subr.bf16.mxu1 %v407_v0 }
  0x45   :  { %305 = vmatpush3.bf16.msra.mxu1 %v324_v8 }
  0x49   :  { %279 = vmatpush3.bf16.xpose.msra.mxu0 %v321_v5 }
  0x4a   :  { %280 = vmatprep.subr.bf16.mxu0 %v407_v0 }
  0x51   :  { %281 = vmatpush3.bf16.xpose.msra.mxu0 %v322_v6 }
  0x52   :  { %282 = vmatprep.subr.bf16.mxu0 %v407_v0 }
  0x59   :  { %283 = vmatpush3.bf16.xpose.msra.mxu0 %v323_v7 }
  0x5a   :  { %284 = vmatprep.subr.bf16.mxu0 %v407_v0 }
  0x61   :  { %285 = vmatpush3.bf16.xpose.msra.mxu0 %v324_v8 }
  0x68   :  { %287 = vmatmul.mubr.bf16.vlgmr.msra.gmra.mrb[0].mxu0 %v60_v11 }
 0x13b   :  { %v143_v14 = vpop.f32.mrb[0].mxu0 }
 0x13c   :  { %v288_v15 = vpop.f32.mrb[1].mxu0  ;;  %v152_v16 = vsel %vm151_vm1, %v143_v14, -1e+30 }
 0x13d   :  { %153 = vmax.xlane.f32.xlu0 %v152_v16  ;;  %v146_v17 = vpop.f32.mrb[2].mxu0 }
 0x13e   :  { %v289_v18 = vpop.f32.mrb[3].mxu0 }
 0x1ca   :  { %v154_v19 = vpop.xlane.xlu0 %153 }
 0x1cb   :  { %v155_v20 = vsub.f32 %v152_v16, %v154_v19 }
 0x1cd   :  { %v156_v21 = vmul.f32 1.442695, %v155_v20 }
 0x1cf   :  { %325 = vpow2.f32 %v156_v21 }
 0x1d9   :  { %v326_v22 = vpop.eup %325 }
 0x1da   :  { %158 = vadd.xlane.f32.xlu0 %v326_v22 }
 0x267   :  { %v159_v23 = vpop.xlane.xlu0 %158 }
 0x268   :  { %327 = vrcp.f32 %v159_v23 }
 0x272   :  { %v328_v24 = vpop.eup %327 }
 0x273   :  { %v161_v25 = vmul.f32 %v328_v24, %v326_v22 }
 0x275   :  { %v162_v26 = vpack.c.bf16 %v161_v25, %v161_v25 }
 0x277   :  { %307 = vmatmul.mubr.bf16.vlgmr.msra.gmra.mrb[0].mxu1 %v162_v26 }
 0x34a   :  { %v198_v27 = vpop.f32.mrb[0].mxu1 }
 0x34b   :  { %v199_v28 = vadd.f32 %v198_v27, %v42_v9  ;;  %v308_v29 = vpop.f32.mrb[1].mxu1 }
 0x34c   :  { %v201_v30 = vpop.f32.mrb[2].mxu1 }
 0x34d   :  { %204 = vadd.xlane.f32.xlu1 %v199_v28  ;;  %v309_v31 = vpop.f32.mrb[3].mxu1 }
 0x3da   :  { %v205_v32 = vpop.xlane.xlu1 %204 }
 0x3db   :  { %v206_v33 = vmul.f32 0.03125, %v205_v32 }
 0x3dd   :  { %v208_v34 = vsub.f32 %v199_v28, %v206_v33 }
 0x3df   :  { %v209_v35 = vsel %vm207_vm2, %v208_v34, 0.0 }
 0x3e0   :  { %v210_v36 = vmul.f32 %v209_v35, %v209_v35 }
 0x3e2   :  { %211 = vadd.xlane.f32.xlu1 %v210_v36 }
 0x46f   :  { %v212_v37 = vpop.xlane.xlu1 %211 }
 0x470   :  { %v213_v38 = vmul.f32 0.03125, %v212_v37 }
 0x472   :  { %v214_v39 = vadd.f32 1e-05, %v213_v38 }
 0x474   :  { %329 = vrsqrt.f32 %v214_v39 }
 0x47e   :  { %v330_v45 = vpop.eup %329 }
 0x47f   :  { %v216_v46 = vmul.f32 %v330_v45, %v209_v35 }
 0x481   :  { %v221_v48 = vmul.f32 %v220_v44, %v216_v46 }
 0x483   :  { %v226_v49 = vadd.f32 %v225_v47, %v221_v48 }
 0x485   :  { %227 = vst [vmem:[#allocation7] sm:$0xff] %v226_v49 }
 0x486   :  { %386 = shalt.err (!%p383_p6)
}
 0x487   :  { %s387_s15 = scalar_lea.hbm %s479_s3, 128 }
 0x488   :  { %p388_p7 = scmp.ne.s32.totalorder %s479_s3, %s387_s15  ;;  %p391_p8 = scmp.lt.u32.totalorder %s387_s15, %s479_s3 }
 0x48a   :  { %p393_p9 = pnand %p391_p8, %p388_p7 }
 0x48c   :  { %396 = shalt.err (!%p393_p9)
}
 0x48d   :  { %237 = dma.vmem_to_hbm [thread:$0]  %s235_s12, 128, %s479_s3, [#allocation4]  }
 0x48e   :  { %401 = dma.done.wait [#allocation4], 128  }
 0x48f   :  { %402 = vsyncadd [#allocation4], 4294967168 }
 0x490   :  { %241 = vsyncpa [#allocation3], 1 }
 0x491   :  { %242 = vsyncpa [#allocation6], 1 }
 0x492   :  { %243 = vsyncpa [#allocation4], 1 }

</bundles_post_ra>
